<compile_context>
chip_gen: v6e
topology: v6e:2x2x1
jax: 0.10.0
libtpu: 0.0.40
codegen_flags: <defaults>
</compile_context>

<pallas_src>
import functools

import jax
import jax.numpy as jnp
from jax.experimental import pallas as pl
from jax.experimental.pallas import tpu as pltpu

_SUBLANE = 8


def _round_up(x, m):
    return ((x + m - 1) // m) * m


def _sigmoid(x):
    # Numerically stable logistic (no inf intermediate for large |x|). Used identically in
    # the kernel and the reference so the strict `w > thresh` compare cannot flip from
    # formulation differences. Do NOT replace with approximate transcendentals.
    z = jnp.exp(-jnp.abs(x))
    return jnp.where(x >= 0.0, 1.0 / (1.0 + z), z / (1.0 + z))


# ----------------------------- kernels ---------------------------------------


def _mask_kernel(x_ref, w_ref, mask_ref, *, spurious):
    """x_mask tile = x tile * w_used, with w_used a (1, F) row broadcast over the tile."""
    w = w_ref[...].astype(jnp.float32)
    m = (1.0 - w) if spurious else w
    mask_ref[...] = (x_ref[...].astype(jnp.float32) * m).astype(mask_ref.dtype)


def _att_kernel(x_ref, w1_ref, b1_ref, w2_ref, b2_ref, thresh_ref, *out_refs,
                batch_size, spurious, emit_mask, emit_psum):
    """Fused attention path for one batch tile:
         scores = LeakyReLU(x @ W1 + b1) @ W2 + b2 ; w = threshold(sigmoid(scores))
       emit_mask: also x_mask = x * w (or x * (1 - w))            [att_mean=False]
       emit_psum: also per-tile column sum of w over valid rows   [att_mean=True]"""
    x = x_ref[...].astype(jnp.float32)
    h = jnp.dot(x, w1_ref[...], preferred_element_type=jnp.float32) + b1_ref[...]
    h = jnp.where(h > 0.0, h, 0.01 * h)                       # LeakyReLU(0.01)
    s = jnp.dot(h, w2_ref[...], preferred_element_type=jnp.float32) + b2_ref[...]
    w = _sigmoid(s)
    w = jnp.where(w > thresh_ref[0], w, jnp.zeros_like(w))
    out_refs[0][...] = w.astype(out_refs[0].dtype)
    if emit_mask:
        out_refs[1][...] = (x * ((1.0 - w) if spurious else w)).astype(out_refs[1].dtype)
    if emit_psum:
        tb = x.shape[0]
        # Mask rows >= B: the partial last tile reads undefined data whose writes Pallas
        # drops, but the in-kernel reduction must exclude them explicitly.
        row = jax.lax.broadcasted_iota(jnp.int32, (tb, 1), 0) + pl.program_id(0) * tb
        col_sum = jnp.sum(jnp.where(row < batch_size, w, 0.0), axis=0, keepdims=True)
        psum_ref = out_refs[-1]
        psum_ref[...] = jnp.zeros(psum_ref.shape, jnp.float32)
        psum_ref[0:1, :] = col_sum


# ----------------------------- tiling / params --------------------------------


def _pick_tb(B, F, block_b, itemsize):
    """Batch-tile rows: big enough to amortize per-step overhead, small enough that the
    double-buffered working set stays under a budget safe on v5e/v6e/v7x, and small enough
    to give >= ~4 grid steps on large batches (megacore sharding + pipelining)."""
    budget = 24 * 1024 * 1024                       # batch-tile VMEM budget (conservative)
    per_row = 6 * F * max(itemsize, 4)              # up to 3 (TB, F) arrays, double-buffered
    cap = max(_SUBLANE, (budget // per_row) // _SUBLANE * _SUBLANE)
    tb = min(block_b, cap)
    tb = min(tb, max(256, _round_up(-(-B // 4), _SUBLANE)))   # >= 4 steps when B is large
    tb = min(tb, _round_up(B, _SUBLANE))
    return max(tb, _SUBLANE)


def _compiler_params(TB, F, n_bf_tiles, itemsize, attention):
    est = 2 * n_bf_tiles * TB * F * itemsize                   # double-buffered batch tiles
    if attention:
        est += 2 * (2 * F * F + 2 * F + 8 * F) * 4             # resident weights/biases/psum
    est = int(1.5 * est)
    return pltpu.CompilerParams(
        dimension_semantics=("parallel",),
        vmem_limit_bytes=int(min(max(est, 32 << 20), 64 << 20)),
    )


# ----------------------------- wrapper ----------------------------------------


def feature_split_forward(x, params, mode="causal", attention=False, att_mean=False,
                          block_b=2048):
    """FeatureSplit.forward. x: (B, F). Returns (x_mask, w); outputs follow x's dtype."""
    if mode not in ("causal", "spurious"):
        raise ValueError("Mode must be one of 'causal' or 'spurious'")
    spurious = mode == "spurious"

    B, F = x.shape
    out_dtype = x.dtype
    itemsize = jnp.dtype(out_dtype).itemsize
    TB = _pick_tb(B, F, block_b, itemsize)
    n_tiles = pl.cdiv(B, TB)
    grid = (n_tiles,)

    thresh = jnp.asarray(params["thresh"], jnp.float32).reshape(1)

    x_spec = pl.BlockSpec((TB, F), lambda i: (i, 0))          # batch-tiled, full-F blocks
    row_spec = pl.BlockSpec((1, F), lambda i: (0, 0))         # VMEM-resident row
    sq_spec = pl.BlockSpec((F, F), lambda i: (0, 0))          # VMEM-resident matrix
    smem_spec = pl.BlockSpec(memory_space=pltpu.MemorySpace.SMEM)

    if attention:
        w1 = jnp.asarray(params["att_w1"], jnp.float32)       # (in, out) = torch weight.T
        b1 = jnp.asarray(params["att_b1"], jnp.float32).reshape(1, F)
        w2 = jnp.asarray(params["att_w2"], jnp.float32)
        b2 = jnp.asarray(params["att_b2"], jnp.float32).reshape(1, F)

        if not att_mean:
            # Fully fused: one pass over x emits both w and x_mask.
            w_out, mask = pl.pallas_call(
                functools.partial(_att_kernel, batch_size=B, spurious=spurious,
                                  emit_mask=True, emit_psum=False),
                out_shape=(jax.ShapeDtypeStruct((B, F), out_dtype),
                           jax.ShapeDtypeStruct((B, F), out_dtype)),
                grid=grid,
                in_specs=[x_spec, sq_spec, row_spec, sq_spec, row_spec, smem_spec],
                out_specs=(x_spec, x_spec),
                compiler_params=_compiler_params(TB, F, 3, itemsize, True),
            )(x, w1, b1, w2, b2, thresh)
            return mask, w_out

        # att_mean=True: pass 1 emits w and per-tile partial column sums (w is never
        # re-read from HBM); the tiny cross-tile sum/divide runs in JAX; pass 2 masks.
        w_out, psums = pl.pallas_call(
            functools.partial(_att_kernel, batch_size=B, spurious=spurious,
                              emit_mask=False, emit_psum=True),
            out_shape=(jax.ShapeDtypeStruct((B, F), out_dtype),
                       jax.ShapeDtypeStruct((n_tiles * 8, F), jnp.float32)),
            grid=grid,
            in_specs=[x_spec, sq_spec, row_spec, sq_spec, row_spec, smem_spec],
            out_specs=(x_spec, pl.BlockSpec((8, F), lambda i: (i, 0))),
            compiler_params=_compiler_params(TB, F, 2, itemsize, True),
        )(x, w1, b1, w2, b2, thresh)
        w_mean = (jnp.sum(psums, axis=0, keepdims=True) / B).astype(jnp.float32)
        mask = pl.pallas_call(
            functools.partial(_mask_kernel, spurious=spurious),
            out_shape=jax.ShapeDtypeStruct((B, F), out_dtype),
            grid=grid,
            in_specs=[x_spec, row_spec],
            out_specs=x_spec,
            compiler_params=_compiler_params(TB, F, 2, itemsize, False),
        )(x, w_mean)
        return mask, w_out

    # attention=False: sigmoid+threshold of the (F,) learned weight is essentially free in
    # plain JAX (no dedicated kernel launch); the mask kernel broadcasts the row per tile.
    weight = jnp.asarray(params["weight"], jnp.float32)
    w = _sigmoid(weight)
    w = jnp.where(w > thresh[0], w, jnp.zeros_like(w))
    mask = pl.pallas_call(
        functools.partial(_mask_kernel, spurious=spurious),
        out_shape=jax.ShapeDtypeStruct((B, F), out_dtype),
        grid=grid,
        in_specs=[x_spec, row_spec],
        out_specs=x_spec,
        compiler_params=_compiler_params(TB, F, 2, itemsize, False),
    )(x, w.reshape(1, F))
    return mask, w


# ----------------------------- reference --------------------------------------


def feature_split_reference(x, params, mode="causal", attention=False, att_mean=False):
    """Pure-JAX (f32) mirror of FeatureSplit.forward for validation."""
    x32 = x.astype(jnp.float32)
    thresh = jnp.asarray(params["thresh"], jnp.float32)
    if attention:
        h = x32 @ params["att_w1"].astype(jnp.float32) + params["att_b1"].astype(jnp.float32)
        h = jnp.where(h > 0.0, h, 0.01 * h)
        s = h @ params["att_w2"].astype(jnp.float32) + params["att_b2"].astype(jnp.float32)
        w = _sigmoid(s)
    else:
        w = _sigmoid(params["weight"].astype(jnp.float32))
    w = jnp.where(w > thresh, w, jnp.zeros_like(w))
    w_used = jnp.mean(w, axis=0) if (attention and att_mean) else w
    x_mask = x32 * w_used if mode == "causal" else x32 * (1.0 - w_used)
    return x_mask, w


if __name__ == "__main__":
    key = jax.random.PRNGKey(0)

    def make_inputs(B, F, k):
        kx, kw, k1, k2, kb1, kb2 = jax.random.split(k, 6)
        x = jax.random.normal(kx, (B, F), dtype=jnp.float32)
        params = {
            "weight": 0.5 * jax.random.normal(kw, (F,), dtype=jnp.float32),
            "thresh": jnp.float32(0.2),
            # att_net params stored as (in_features, out_features) = torch Linear.weight.T
            "att_w1": 0.2 * jax.random.normal(k1, (F, F), dtype=jnp.float32),
            "att_b1": 0.1 * jax.random.normal(kb1, (F,), dtype=jnp.float32),
            "att_w2": 0.2 * jax.random.normal(k2, (F, F), dtype=jnp.float32),
            "att_b2": 0.1 * jax.random.normal(kb2, (F,), dtype=jnp.float32),
        }
        return x, params

    def check(x, params, cfg, block_b, atol, rtol):
        got_mask, got_w = jax.block_until_ready(
            feature_split_forward(x, params, block_b=block_b, **cfg))
        ref_mask, ref_w = feature_split_reference(x, params, **cfg)
        assert got_mask.shape == ref_mask.shape and got_w.shape == ref_w.shape, cfg
        assert jnp.allclose(got_mask.astype(jnp.float32), ref_mask, atol=atol, rtol=rtol), cfg
        assert jnp.allclose(got_w.astype(jnp.float32), ref_w, atol=atol, rtol=rtol), cfg

    cases = [
        dict(mode="causal", attention=False, att_mean=False),   # module defaults
        dict(mode="spurious", attention=False, att_mean=False),
        dict(mode="causal", attention=True, att_mean=False),
        dict(mode="spurious", attention=True, att_mean=False),
        dict(mode="causal", attention=True, att_mean=True),
    ]

    k_a, k_b = jax.random.split(key)

    # n_features=128 (lane-aligned). Default tiles (grid=1 at this batch) and a tiny
    # block_b to exercise multi-step grids, partial last tiles and psum aggregation.
    x, params = make_inputs(20, 128, k_a)
    for cfg in cases:
        check(x, params, cfg, block_b=2048, atol=1e-4, rtol=1e-4)
        check(x, params, cfg, block_b=8, atol=1e-4, rtol=1e-4)

    # bf16 storage path (halves HBM traffic; math stays f32 inside the kernels).
    xb = x.astype(jnp.bfloat16)
    for cfg in (dict(mode="causal", attention=True, att_mean=False),
                dict(mode="causal", attention=False, att_mean=False)):
        check(xb, params, cfg, block_b=2048, atol=3e-2, rtol=3e-2)

    # F not a multiple of 128 and B not a multiple of 8: full-F blocks + masked partial
    # batch tile, no padding / cropping round trips needed.
    x2, params2 = make_inputs(13, 96, k_b)
    for cfg in (dict(mode="causal", attention=False, att_mean=False),
                dict(mode="causal", attention=True, att_mean=True)):
        check(x2, params2, cfg, block_b=2048, atol=1e-4, rtol=1e-4)

    print("KERNEL_OK")
</pallas_src>

<mosaic_0001>
module attributes {stable_mosaic.version = 11 : i64} {
  func.func @_mask_kernel(%arg0: i32, %arg1: memref<24x128xf32, #tpu.memory_space<vmem>>, %arg2: memref<1x128xf32, #tpu.memory_space<vmem>>, %arg3: memref<24x128xf32, #tpu.memory_space<vmem>>) attributes {dimension_semantics = [#tpu.dimension_semantics<parallel>], iteration_bounds = array<i64: 1>, scalar_prefetch = 0 : i64, scratch_operands = 0 : i64, tpu.core_type = #tpu.core_type<tc>, window_params = [{transform_indices = @transform_0, window_bounds = array<i64: 24, 128>}, {pipeline_mode = #tpu.pipeline_mode<synchronous>, transform_indices = @transform_1, window_bounds = array<i64: 1, 128>}, {transform_indices = @transform_2, window_bounds = array<i64: 24, 128>}]} {
    %c0 = arith.constant 0 : index
    %c0_0 = arith.constant 0 : index
    %0 = vector.load %arg2[%c0, %c0_0] : memref<1x128xf32, #tpu.memory_space<vmem>>, vector<1x128xf32>
    %c0_1 = arith.constant 0 : index
    %c0_2 = arith.constant 0 : index
    %1 = vector.load %arg1[%c0_1, %c0_2] : memref<24x128xf32, #tpu.memory_space<vmem>>, vector<24x128xf32>
    %2 = vector.broadcast %0 : vector<1x128xf32> to vector<24x128xf32>
    %3 = arith.mulf %1, %2 : vector<24x128xf32>
    %c0_3 = arith.constant 0 : index
    %c0_4 = arith.constant 0 : index
    %4 = vector.load %arg3[%c0_3, %c0_4] : memref<24x128xf32, #tpu.memory_space<vmem>>, vector<24x128xf32>
    tpu.vector_store %arg3[%c0_3, %c0_4], %3 {strides = array<i32>} : memref<24x128xf32, #tpu.memory_space<vmem>>, vector<24x128xf32>,
    return
  }
  func.func @transform_0(%arg0: i32) -> (i32, i32) {
    %c0_i32 = arith.constant 0 : i32
    %c0_i32_0 = arith.constant 0 : i32
    return %arg0, %c0_i32 : i32, i32
  }
  func.func @transform_1(%arg0: i32) -> (i32, i32) {
    %c0_i32 = arith.constant 0 : i32
    %c0_i32_0 = arith.constant 0 : i32
    %c0_i32_1 = arith.constant 0 : i32
    return %c0_i32, %c0_i32_0 : i32, i32
  }
  func.func @transform_2(%arg0: i32) -> (i32, i32) {
    %c0_i32 = arith.constant 0 : i32
    %c0_i32_0 = arith.constant 0 : i32
    return %arg0, %c0_i32 : i32, i32
  }
}

</mosaic_0001>

<bundles_post_ra>
// kernel: tpu_custom_call.1
= control target key start
LH: loop header
LB: loop body
LE: loop exit
PB: predicated region body
PF: predicated region fallthrough
CT: control target
= control target key end

     0   :  { %7 = vsyncpa [#allocation3], 0  ;;  %s136_s0 = inlined_call_operand.hbm [shape: f32[20,128], index: 0, kind: input, shape index: {}]   ;;  %s137_s1 = inlined_call_operand.vmem [shape: f32[1,128], index: 1, kind: input, shape index: {}]   ;;  %s138_s2 = inlined_call_operand.hbm [shape: f32[20,128], index: 2, kind: output, shape index: {}]  }
   0x1   :  { %8 = vsyncpa [#allocation4], 0  ;;  %s108_s9 = smov [#allocation2]  }
   0x2   :  { %s14_s10 = sshll.u32 %s108_s9, 4  ;;  %s15_s10 = int_to_ptr.vmem [resolvable:$true] %s14_s10 }
   0x3   :  { %s72_s11 = scalar_lea.vmem %s15_s10, 384  ;;  %p77_p1 = scmp.lt.s32.totalorder %s15_s10, %s15_s10 }
   0x4   :  { %p73_p0 = scmp.ne.s32.totalorder %s15_s10, %s72_s11  ;;  %p78_p2 = scmp.lt.s32.totalorder %s72_s11, %s72_s11 }
   0x6   :  { %p79_p3 = por %p78_p2, %p77_p1 }
   0x8   :  { %p80_p4 = pnand %p79_p3, %p73_p0 }
   0xa   :  { %83 = shalt.err (!%p80_p4)
}
   0xb   :  { %s109_s12 = smov 128   ;;  %s110_s13 = smov 8  }
   0xc   :  { %20 = dma.hbm_to_vmem [thread:$0]  %s136_s0, 384, %s15_s10, [#allocation3], %s109_s12, %s109_s12, %s110_s13  }
   0xd   :  { %104 = dma.done.wait [#allocation3], 384  }
   0xe   :  { %105 = vsyncadd [#allocation3], 4294966912  ;;  %s111_s16 = smov [#allocation5]   ;;  %v59_v0 = vld [vmem:[%s137_s1] ss:$0 sm:$0xff]  ;;  %v28_v2 = vld [vmem:[#allocation2 + $0x8] sm:$0xff] }
   0xf   :  { %s47_s17 = sshll.u32 %s111_s16, 4  ;;  %v27_v1 = vld [vmem:[#allocation2] sm:$0xff]  ;;  %v37_v4 = vmul.f32 %v59_v0, %v28_v2  ;;  %v29_v5 = vld [vmem:[#allocation2 + $0x10] sm:$0xff]  ;;  %s48_s17 = int_to_ptr.vmem [resolvable:$true] %s47_s17 }
  0x10   :  { %v36_v3 = vmul.f32 %v59_v0, %v27_v1  ;;  %v38_v6 = vmul.f32 %v59_v0, %v29_v5  ;;  %s84_s20 = scalar_lea.vmem %s48_s17, 384  ;;  %p89_p6 = scmp.lt.s32.totalorder %s48_s17, %s48_s17 }
  0x11   :  { %40 = vst [vmem:[#allocation5 + $0x8] sm:$0xff] %v37_v4  ;;  %p85_p5 = scmp.ne.s32.totalorder %s48_s17, %s84_s20  ;;  %p90_p7 = scmp.lt.s32.totalorder %s84_s20, %s84_s20 }
  0x12   :  { %39 = vst [vmem:[#allocation5] sm:$0xff] %v36_v3  ;;  %41 = vst [vmem:[#allocation5 + $0x10] sm:$0xff] %v38_v6 }
  0x13   :  { %p91_p8 = por %p90_p7, %p89_p6 }
  0x15   :  { %p92_p9 = pnand %p91_p8, %p85_p5 }
  0x17   :  { %95 = shalt.err (!%p92_p9)
}
  0x18   :  { %53 = dma.vmem_to_hbm [thread:$0]  %s48_s17, 384, %s138_s2, [#allocation4], %s109_s12, %s109_s12, %s110_s13  }
  0x19   :  { %106 = dma.done.wait [#allocation4], 384  }
  0x1a   :  { %107 = vsyncadd [#allocation4], 4294966912 }
  0x1b   :  { %57 = vsyncpa [#allocation3], 1 }
  0x1c   :  { %58 = vsyncpa [#allocation4], 1 }

</bundles_post_ra>
